<compile_context>
chip_gen: v7x
topology: tpu7x:2x2x1
jax: 0.10.0
libtpu: 0.0.40
codegen_flags: <defaults>
</compile_context>

<pallas_src>
import functools

import jax
import jax.numpy as jnp
from jax.experimental import pallas as pl
from jax.experimental.pallas import tpu as pltpu


def _ceil_to(a: int, b: int) -> int:
    return -(-a // b) * b


def attention_head_kernel(x_ref, w_att_ref, b_att_ref, gamma_ref, beta_ref,
                          w_lin_t_ref, b_lin_ref, o_ref, *, out_transposed):
    # Features arrive in their native dtype; single on-chip cast (no-op for f32 inputs).
    x = x_ref[...].astype(jnp.float32)                       # (NB, T, D)
    wa = w_att_ref[...][None]                                # (1, 1, D)
    b_att = b_att_ref[0]                                     # scalar (SMEM)

    # ---- AttentionLayer: scores -> softmax over T -> weighted pooling ----
    # Lane-dense (NB, T) softmax intermediates (no trailing size-1 lane axis).
    scores = jnp.sum(x * wa, axis=-1) + b_att                # (NB, T)
    m = jnp.max(scores, axis=-1, keepdims=True)              # (NB, 1)
    e = jnp.exp(scores - m)                                  # (NB, T)
    denom = jnp.sum(e, axis=-1, keepdims=True)               # (NB, 1)
    # Pool with unnormalized weights, then rescale the pooled row once.  The approx
    # reciprocal's per-row scale error is absorbed exactly by LayerNorm's scale invariance.
    pooled = jnp.sum(e[:, :, None] * x, axis=1)              # (NB, D)
    pooled = pooled * pl.reciprocal(denom, approx=True)      # (NB, D)

    # ---- DeepHead (len(dimensions)==2): LayerNorm -> ReLU -> Linear ----
    mean = jnp.mean(pooled, axis=-1, keepdims=True)                   # (NB, 1)
    var = jnp.mean((pooled - mean) ** 2, axis=-1, keepdims=True)      # biased (nn.LayerNorm)
    y = (pooled - mean) * jax.lax.rsqrt(var + 1e-5)
    y = y * gamma_ref[...] + beta_ref[...]                            # (NB, D)
    y = jnp.maximum(y, 0.0)                                           # ReLU

    if out_transposed:
        # out_t[o, n] = sum_d w_lin_t[o, d] * y[n, d]  — batch on the lane axis (dense stores)
        out = jax.lax.dot_general(
            w_lin_t_ref[...], y,
            dimension_numbers=(((1,), (1,)), ((), ())),
            preferred_element_type=jnp.float32)                       # (out_dim, NB)
    else:
        out = jax.lax.dot_general(
            y, w_lin_t_ref[...],
            dimension_numbers=(((1,), (1,)), ((), ())),
            preferred_element_type=jnp.float32)                       # (NB, out_dim)
    o_ref[...] = (out + b_lin_ref[...]).astype(o_ref.dtype)


def attention_head(features, w_att, b_att, ln_gamma, ln_beta, w_lin, b_lin,
                   *, block_n=None):
    """features: (N, T, D), any float dtype.  Returns (N, out_dim) float32."""
    N, T, D = features.shape
    out_dim = w_lin.shape[-1]

    w_att_row = jnp.reshape(w_att, (1, D)).astype(jnp.float32)           # (1, D)
    b_att_s = jnp.reshape(b_att, (1,)).astype(jnp.float32)               # (1,) -> SMEM
    gamma = jnp.reshape(ln_gamma, (1, D)).astype(jnp.float32)            # (1, D)
    beta = jnp.reshape(ln_beta, (1, D)).astype(jnp.float32)              # (1, D)
    w_lin_t = jnp.reshape(w_lin, (D, out_dim)).T.astype(jnp.float32)     # (out_dim, D)

    itemsize = jnp.dtype(features.dtype).itemsize
    # Effective resident bytes per batch row after (8, 128) layout padding.
    row_bytes = _ceil_to(T, 8) * _ceil_to(D, 128) * itemsize

    if block_n is None:
        budget = 8 * 1024 * 1024        # ~8 MiB of features per block (x2 for double-buffering)
        block_n = max(1, budget // row_bytes)

    if block_n >= N:
        if N >= 256:
            # Keep >= 2 grid steps so ("parallel",) can shard across v7x's two TensorCores.
            block_n = _ceil_to(pl.cdiv(N, 2), 128)
        else:
            block_n = N
    if block_n < N:
        if block_n >= 128:
            block_n = (block_n // 128) * 128                  # lane-dense output blocks
        else:
            block_n = min(N, max(8, (block_n // 8) * 8))      # large T*D: small row blocks

    out_transposed = (block_n == N) or (block_n % 128 == 0)
    grid = (pl.cdiv(N, block_n),)

    # Scoped-VMEM limit: double-buffered native-dtype block + one f32 working copy + slack.
    feat_block_elems = block_n * _ceil_to(T, 8) * _ceil_to(D, 128)
    vmem_limit = 2 * feat_block_elems * itemsize + feat_block_elems * 4 + (8 << 20)
    vmem_limit = int(min(max(vmem_limit, 32 << 20), 64 << 20))

    kernel = functools.partial(attention_head_kernel, out_transposed=out_transposed)

    in_specs = [
        pl.BlockSpec((block_n, T, D), lambda i: (i, 0, 0)),   # features block (native dtype)
        pl.BlockSpec((1, D), lambda i: (0, 0)),               # attention weight (row)
        pl.BlockSpec(memory_space=pltpu.MemorySpace.SMEM),    # attention bias (scalar)
        pl.BlockSpec((1, D), lambda i: (0, 0)),               # layernorm gamma
        pl.BlockSpec((1, D), lambda i: (0, 0)),               # layernorm beta
        pl.BlockSpec((out_dim, D), lambda i: (0, 0)),         # linear weight, transposed
    ]
    if out_transposed:
        b_lin_arg = jnp.reshape(b_lin, (out_dim, 1)).astype(jnp.float32)
        in_specs.append(pl.BlockSpec((out_dim, 1), lambda i: (0, 0)))
        out_shape = jax.ShapeDtypeStruct((out_dim, N), jnp.float32)
        out_spec = pl.BlockSpec((out_dim, block_n), lambda i: (0, i))
    else:
        b_lin_arg = jnp.reshape(b_lin, (1, out_dim)).astype(jnp.float32)
        in_specs.append(pl.BlockSpec((1, out_dim), lambda i: (0, 0)))
        out_shape = jax.ShapeDtypeStruct((N, out_dim), jnp.float32)
        out_spec = pl.BlockSpec((block_n, out_dim), lambda i: (i, 0))

    out = pl.pallas_call(
        kernel,
        out_shape=out_shape,
        grid_spec=pltpu.PrefetchScalarGridSpec(
            num_scalar_prefetch=0,
            grid=grid,
            in_specs=in_specs,
            out_specs=out_spec,
        ),
        compiler_params=pltpu.CompilerParams(
            dimension_semantics=("parallel",),
            vmem_limit_bytes=vmem_limit),
    )(features, w_att_row, b_att_s, gamma, beta, w_lin_t, b_lin_arg)

    return out.T if out_transposed else out


def _reference(features, w_att, b_att, ln_gamma, ln_beta, w_lin, b_lin):
    scores = jnp.einsum("ntd,do->nto", features, w_att) + b_att[0, 0]
    w = jax.nn.softmax(scores, axis=1)
    pooled = jnp.sum(w * features, axis=1)                       # (N, D)
    mean = jnp.mean(pooled, axis=-1, keepdims=True)
    var = jnp.mean((pooled - mean) ** 2, axis=-1, keepdims=True)
    y = (pooled - mean) / jnp.sqrt(var + 1e-5) * ln_gamma + ln_beta
    y = jnp.maximum(y, 0.0)
    return y @ w_lin + b_lin                                     # (N, out_dim)


if __name__ == "__main__":
    # Small shapes implied by forward(): features (N, T, D); dimensions = [D, 1]
    N, T, D = 2, 8, 32
    dimensions = [D, 1]
    out_dim = dimensions[1]

    key = jax.random.PRNGKey(0)
    k_x, k_wa, k_ba, k_wl, k_bl = jax.random.split(key, 5)

    features = jax.random.normal(k_x, (N, T, D), dtype=jnp.float32)

    # Deterministic parameter init (synthetic; no checkpoint load).
    w_att = jax.random.normal(k_wa, (D, 1), dtype=jnp.float32) * 0.1
    b_att = jax.random.normal(k_ba, (1, 1), dtype=jnp.float32) * 0.1
    ln_gamma = jnp.ones((1, D), dtype=jnp.float32)
    ln_beta = jnp.zeros((1, D), dtype=jnp.float32)
    w_lin = jax.random.normal(k_wl, (D, out_dim), dtype=jnp.float32) * 0.1
    b_lin = jax.random.normal(k_bl, (1, out_dim), dtype=jnp.float32) * 0.1

    # --- primary check: tiny batch, single resident block ---
    out = attention_head(features, w_att, b_att, ln_gamma, ln_beta, w_lin, b_lin)
    out = jax.block_until_ready(out)
    ref = _reference(features, w_att, b_att, ln_gamma, ln_beta, w_lin, b_lin)
    assert out.shape == (N, out_dim)
    assert jnp.allclose(out, ref, atol=1e-4, rtol=1e-4)

    # --- secondary check: ragged multi-block grid (no padding, masked writeback) ---
    N2 = 300
    features2 = jax.random.normal(jax.random.PRNGKey(1), (N2, T, D), dtype=jnp.float32)
    out2 = attention_head(features2, w_att, b_att, ln_gamma, ln_beta, w_lin, b_lin,
                          block_n=128)
    out2 = jax.block_until_ready(out2)
    ref2 = _reference(features2, w_att, b_att, ln_gamma, ln_beta, w_lin, b_lin)
    assert out2.shape == (N2, out_dim)
    assert jnp.allclose(out2, ref2, atol=1e-4, rtol=1e-4)

    print("KERNEL_OK")
</pallas_src>

<mosaic_0001>
module attributes {stable_mosaic.version = 11 : i64} {
  func.func @attention_head_kernel(%arg0: i32, %arg1: memref<2x8x32xf32, #tpu.memory_space<vmem>>, %arg2: memref<1x32xf32, #tpu.memory_space<vmem>>, %arg3: memref<1xf32, #tpu.memory_space<smem>>, %arg4: memref<1x32xf32, #tpu.memory_space<vmem>>, %arg5: memref<1x32xf32, #tpu.memory_space<vmem>>, %arg6: memref<1x32xf32, #tpu.memory_space<vmem>>, %arg7: memref<1x1xf32, #tpu.memory_space<vmem>>, %arg8: memref<1x2xf32, #tpu.memory_space<vmem>>) attributes {dimension_semantics = [#tpu.dimension_semantics<parallel>], iteration_bounds = array<i64: 1>, scalar_prefetch = 0 : i64, scratch_operands = 0 : i64, tpu.core_type = #tpu.core_type<tc>, window_params = [{transform_indices = @transform_0, window_bounds = array<i64: 2, 8, 32>}, {pipeline_mode = #tpu.pipeline_mode<synchronous>, transform_indices = @transform_1, window_bounds = array<i64: 1, 32>}, {transform_indices = @transform_2, window_bounds = array<i64: 1>}, {pipeline_mode = #tpu.pipeline_mode<synchronous>, transform_indices = @transform_3, window_bounds = array<i64: 1, 32>}, {pipeline_mode = #tpu.pipeline_mode<synchronous>, transform_indices = @transform_4, window_bounds = array<i64: 1, 32>}, {pipeline_mode = #tpu.pipeline_mode<synchronous>, transform_indices = @transform_5, window_bounds = array<i64: 1, 32>}, {pipeline_mode = #tpu.pipeline_mode<synchronous>, transform_indices = @transform_6, window_bounds = array<i64: 1, 1>}, {transform_indices = @transform_7, window_bounds = array<i64: 1, 2>}]} {
    %c0 = arith.constant 0 : index
    %c0_0 = arith.constant 0 : index
    %c0_1 = arith.constant 0 : index
    %0 = vector.load %arg1[%c0, %c0_0, %c0_1] : memref<2x8x32xf32, #tpu.memory_space<vmem>>, vector<2x8x32xf32>
    %c0_2 = arith.constant 0 : index
    %c0_3 = arith.constant 0 : index
    %1 = vector.load %arg2[%c0_2, %c0_3] : memref<1x32xf32, #tpu.memory_space<vmem>>, vector<1x32xf32>
    %2 = vector.shape_cast %1 : vector<1x32xf32> to vector<1x1x32xf32>
    %c0_4 = arith.constant 0 : index
    %3 = memref.load %arg3[%c0_4] : memref<1xf32, #tpu.memory_space<smem>>
    %4 = vector.broadcast %2 : vector<1x1x32xf32> to vector<2x8x32xf32>
    %5 = arith.mulf %0, %4 : vector<2x8x32xf32>
    %cst = arith.constant dense<0.000000e+00> : vector<2x8xf32>
    %6 = vector.multi_reduction <add>, %5, %cst [2] : vector<2x8x32xf32> to vector<2x8xf32>
    %7 = vector.broadcast %3 : f32 to vector<2x8xf32>
    %8 = arith.addf %6, %7 : vector<2x8xf32>
    %cst_5 = arith.constant dense<0xFF800000> : vector<2xf32>
    %9 = vector.multi_reduction <maximumf>, %8, %cst_5 [1] : vector<2x8xf32> to vector<2xf32>
    %10 = vector.shape_cast %9 : vector<2xf32> to vector<2x1xf32>
    %11 = vector.broadcast %10 : vector<2x1xf32> to vector<2x8xf32>
    %12 = arith.subf %8, %11 : vector<2x8xf32>
    %13 = math.exp %12 : vector<2x8xf32>
    %cst_6 = arith.constant dense<0.000000e+00> : vector<2xf32>
    %14 = vector.multi_reduction <add>, %13, %cst_6 [1] : vector<2x8xf32> to vector<2xf32>
    %15 = vector.shape_cast %14 : vector<2xf32> to vector<2x1xf32>
    %16 = vector.shape_cast %13 : vector<2x8xf32> to vector<2x8x1xf32>
    %17 = vector.broadcast %16 : vector<2x8x1xf32> to vector<2x8x32xf32>
    %18 = arith.mulf %17, %0 : vector<2x8x32xf32>
    %cst_7 = arith.constant dense<0.000000e+00> : vector<2x32xf32>
    %19 = vector.multi_reduction <add>, %18, %cst_7 [1] : vector<2x8x32xf32> to vector<2x32xf32>
    %20 = tpu.reciprocal %15 {approx = true} : vector<2x1xf32> -> vector<2x1xf32>
    %21 = vector.broadcast %20 : vector<2x1xf32> to vector<2x32xf32>
    %22 = arith.mulf %19, %21 : vector<2x32xf32>
    %cst_8 = arith.constant dense<0.000000e+00> : vector<2xf32>
    %23 = vector.multi_reduction <add>, %22, %cst_8 [1] : vector<2x32xf32> to vector<2xf32>
    %24 = vector.shape_cast %23 : vector<2xf32> to vector<2x1xf32>
    %cst_9 = arith.constant 3.200000e+01 : f32
    %25 = vector.broadcast %cst_9 : f32 to vector<2x1xf32>
    %26 = arith.divf %24, %25 : vector<2x1xf32>
    %27 = vector.broadcast %26 : vector<2x1xf32> to vector<2x32xf32>
    %28 = arith.subf %22, %27 : vector<2x32xf32>
    %29 = arith.mulf %28, %28 : vector<2x32xf32>
    %cst_10 = arith.constant dense<0.000000e+00> : vector<2xf32>
    %30 = vector.multi_reduction <add>, %29, %cst_10 [1] : vector<2x32xf32> to vector<2xf32>
    %31 = vector.shape_cast %30 : vector<2xf32> to vector<2x1xf32>
    %cst_11 = arith.constant 3.200000e+01 : f32
    %32 = vector.broadcast %cst_11 : f32 to vector<2x1xf32>
    %33 = arith.divf %31, %32 : vector<2x1xf32>
    %34 = vector.broadcast %26 : vector<2x1xf32> to vector<2x32xf32>
    %35 = arith.subf %22, %34 : vector<2x32xf32>
    %cst_12 = arith.constant 9.99999974E-6 : f32
    %36 = vector.broadcast %cst_12 : f32 to vector<2x1xf32>
    %37 = arith.addf %33, %36 : vector<2x1xf32>
    %38 = math.rsqrt %37 : vector<2x1xf32>
    %39 = vector.broadcast %38 : vector<2x1xf32> to vector<2x32xf32>
    %40 = arith.mulf %35, %39 : vector<2x32xf32>
    %c0_13 = arith.constant 0 : index
    %c0_14 = arith.constant 0 : index
    %41 = vector.load %arg4[%c0_13, %c0_14] : memref<1x32xf32, #tpu.memory_space<vmem>>, vector<1x32xf32>
    %42 = vector.broadcast %41 : vector<1x32xf32> to vector<2x32xf32>
    %43 = arith.mulf %40, %42 : vector<2x32xf32>
    %c0_15 = arith.constant 0 : index
    %c0_16 = arith.constant 0 : index
    %44 = vector.load %arg5[%c0_15, %c0_16] : memref<1x32xf32, #tpu.memory_space<vmem>>, vector<1x32xf32>
    %45 = vector.broadcast %44 : vector<1x32xf32> to vector<2x32xf32>
    %46 = arith.addf %43, %45 : vector<2x32xf32>
    %cst_17 = arith.constant 0.000000e+00 : f32
    %47 = vector.broadcast %cst_17 : f32 to vector<2x32xf32>
    %48 = arith.maximumf %46, %47 : vector<2x32xf32>
    %c0_18 = arith.constant 0 : index
    %c0_19 = arith.constant 0 : index
    %49 = vector.load %arg6[%c0_18, %c0_19] : memref<1x32xf32, #tpu.memory_space<vmem>>, vector<1x32xf32>
    %cst_20 = arith.constant dense<0.000000e+00> : vector<1x2xf32>
    %50 = tpu.matmul %49, %48, %cst_20 {dimension_numbers = #tpu.dot_dimension_numbers<[1], [1], [0], [0], [0, 0, 1, 0], [], []>} : vector<1x32xf32>, vector<2x32xf32>, vector<1x2xf32> -> vector<1x2xf32>
    %c0_21 = arith.constant 0 : index
    %c0_22 = arith.constant 0 : index
    %51 = vector.load %arg7[%c0_21, %c0_22] : memref<1x1xf32, #tpu.memory_space<vmem>>, vector<1x1xf32>
    %52 = vector.broadcast %51 : vector<1x1xf32> to vector<1x2xf32>
    %53 = arith.addf %50, %52 : vector<1x2xf32>
    %c0_23 = arith.constant 0 : index
    %c0_24 = arith.constant 0 : index
    %54 = vector.load %arg8[%c0_23, %c0_24] : memref<1x2xf32, #tpu.memory_space<vmem>>, vector<1x2xf32>
    tpu.vector_store %arg8[%c0_23, %c0_24], %53 {strides = array<i32>} : memref<1x2xf32, #tpu.memory_space<vmem>>, vector<1x2xf32>,
    return
  }
  func.func @transform_0(%arg0: i32) -> (i32, i32, i32) {
    %c0_i32 = arith.constant 0 : i32
    %c0_i32_0 = arith.constant 0 : i32
    %c0_i32_1 = arith.constant 0 : i32
    return %arg0, %c0_i32, %c0_i32_0 : i32, i32, i32
  }
  func.func @transform_1(%arg0: i32) -> (i32, i32) {
    %c0_i32 = arith.constant 0 : i32
    %c0_i32_0 = arith.constant 0 : i32
    %c0_i32_1 = arith.constant 0 : i32
    return %c0_i32, %c0_i32_0 : i32, i32
  }
  func.func @transform_2(%arg0: i32) -> i32 {
    %c0_i32 = arith.constant 0 : i32
    %c0_i32_0 = arith.constant 0 : i32
    return %c0_i32 : i32
  }
  func.func @transform_3(%arg0: i32) -> (i32, i32) {
    %c0_i32 = arith.constant 0 : i32
    %c0_i32_0 = arith.constant 0 : i32
    %c0_i32_1 = arith.constant 0 : i32
    return %c0_i32, %c0_i32_0 : i32, i32
  }
  func.func @transform_4(%arg0: i32) -> (i32, i32) {
    %c0_i32 = arith.constant 0 : i32
    %c0_i32_0 = arith.constant 0 : i32
    %c0_i32_1 = arith.constant 0 : i32
    return %c0_i32, %c0_i32_0 : i32, i32
  }
  func.func @transform_5(%arg0: i32) -> (i32, i32) {
    %c0_i32 = arith.constant 0 : i32
    %c0_i32_0 = arith.constant 0 : i32
    %c0_i32_1 = arith.constant 0 : i32
    return %c0_i32, %c0_i32_0 : i32, i32
  }
  func.func @transform_6(%arg0: i32) -> (i32, i32) {
    %c0_i32 = arith.constant 0 : i32
    %c0_i32_0 = arith.constant 0 : i32
    %c0_i32_1 = arith.constant 0 : i32
    return %c0_i32, %c0_i32_0 : i32, i32
  }
  func.func @transform_7(%arg0: i32) -> (i32, i32) {
    %c0_i32 = arith.constant 0 : i32
    %c0_i32_0 = arith.constant 0 : i32
    return %c0_i32, %arg0 : i32, i32
  }
}

</mosaic_0001>

<bundles_post_ra>
// kernel: tpu_custom_call.1
= control target key start
LH: loop header
LB: loop body
LE: loop exit
PB: predicated region body
PF: predicated region fallthrough
CT: control target
= control target key end

     0   :  { %s499_s0 = inlined_call_operand.hbm [shape: f32[2,8,32], index: 0, kind: input, shape index: {}]   ;;  %s500_s1 = inlined_call_operand.vmem [shape: f32[1,32], index: 1, kind: input, shape index: {}]   ;;  %s501_s2 = inlined_call_operand.<no memory space> [shape: f32[1], index: 2, kind: input, shape index: {}]   ;;  %s502_s3 = inlined_call_operand.vmem [shape: f32[1,32], index: 3, kind: input, shape index: {}]   ;;  %s503_s4 = inlined_call_operand.vmem [shape: f32[1,32], index: 4, kind: input, shape index: {}]   ;;  %s504_s5 = inlined_call_operand.vmem [shape: f32[1,32], index: 5, kind: input, shape index: {}]   ;;  %s505_s6 = inlined_call_operand.<no memory space> [shape: f32[1,1], index: 6, kind: input, shape index: {}]   ;;  %s506_s7 = inlined_call_operand.hbm [shape: f32[1,2], index: 7, kind: output, shape index: {}]  }
   0x1   :  { %v13_v0 = vstv %s505_s6 }
   0x2   :  { %14 = vst [vmem:[#allocation3] sm:$0x1] %v13_v0 }
   0x3   :  { %15 = vsyncpa [#allocation5], 0 }
   0x4   :  { %16 = vsyncpa [#allocation6], 0  ;;  %s388_s26 = smov [#allocation4]   ;;  %s340_s30 = scalar_lea.hbm %s499_s0, 256 }
   0x5   :  { %s22_s27 = sshll.u32 %s388_s26, 4  ;;  %p341_p0 = scmp.ne.s32.totalorder %s499_s0, %s340_s30  ;;  %s23_s27 = int_to_ptr.vmem [resolvable:$true] %s22_s27 }
   0x6   :  { %p344_p1 = scmp.lt.u32.totalorder %s340_s30, %s499_s0 }
   0x8   :  { %p346_p2 = pnand %p344_p1, %p341_p0 }
   0xa   :  { %349 = shalt.err (!%p346_p2)
}
   0xb   :  { %s350_s6 = scalar_lea.vmem %s23_s27, 256  ;;  %p355_p4 = scmp.lt.s32.totalorder %s23_s27, %s23_s27 }
   0xc   :  { %p351_p3 = scmp.ne.s32.totalorder %s23_s27, %s350_s6  ;;  %p356_p5 = scmp.lt.s32.totalorder %s350_s6, %s350_s6 }
   0xe   :  { %p357_p6 = por %p356_p5, %p355_p4 }
  0x10   :  { %p358_p7 = pnand %p357_p6, %p351_p3 }
  0x12   :  { %361 = shalt.err (!%p358_p7)
}
  0x13   :  { %s389_s12 = smov 128   ;;  %s390_s13 = smov 8  }
  0x14   :  { %28 = dma.hbm_to_vmem [thread:$0]  %s499_s0, 256, %s23_s27, [#allocation5], %s389_s12, %s389_s12, %s390_s13  }
  0x15   :  { %384 = dma.done.wait [#allocation5], 256  }
  0x16   :  { %385 = vsyncadd [#allocation5], 4294967040  ;;  %v44_v1 = vld [vmem:[#allocation4] sm:$0xff]  ;;  %v311_v2 = vld [vmem:[%s500_s1] ss:$0 sm:$0xff]  ;;  %vm56_vm0 = vcmask 261120   ;;  %v68_v8 = vlaneseq  ;;  %v63_v11 = vstv %s501_s2 }
  0x17   :  { %v45_v3 = vld [vmem:[#allocation4 + $0x8] sm:$0xff]  ;;  %v54_v4 = vmul.f32 %v311_v2, %v44_v1  ;;  %vm78_vm1 = vcmask 1041409   ;;  %vm81_vm2 = vcmask 58368   ;;  %v391_v21 = vmov 0   ;;  %s394_s22 = smov [#allocation7]  }
  0x18   :  { %v55_v5 = vmul.f32 %v311_v2, %v45_v3  ;;  %v69_v9 = vand.u32 127, %v68_v8  ;;  %v455_v10 = vshrl.u32 %v68_v8, 7  ;;  %331 = vset.pattern.permute.xlu0 %v391_v21  ;;  %330 = vset.pattern.permute.xlu1 %v391_v21  ;;  %vm153_vm3 = vcmask 254976   ;;  %v313_v21 = vld [vmem:[%s503_s4] ss:$0 sm:$0xff]  ;;  %s302_s23 = sshll.u32 %s394_s22, 4  ;;  %s303_s23 = int_to_ptr.vmem [resolvable:$true] %s302_s23 }
  0x19   :  { %v57_v6 = vsel %vm56_vm0, %v54_v4, 0.0  ;;  %vm393_vm4 = vmmov 0   ;;  %vm294_vm5 = vcmask 8192   ;;  %s362_s4 = scalar_lea.vmem %s303_s23, 16  ;;  %s366_s24 = scalar_lea.vmem %s303_s23, 32 }
  0x1a   :  { %58 = vadd.xlane.f32.xlu0 %v57_v6  ;;  %v60_v7 = vsel %vm56_vm0, %v55_v5, 0.0  ;;  %v72_v13 = vsub.s32 %v69_v9, %v455_v10  ;;  %v88_v22 = vsub.s32 0, %v455_v10  ;;  %v92_v23 = vsub.s32 1, %v455_v10  ;;  %v205_v9 = vld [vmem:[#allocation3] sm:$0x1]  ;;  %p363_p8 = scmp.ne.s32.totalorder %s303_s23, %s362_s4  ;;  %p367_p9 = scmp.lt.s32.totalorder %s303_s23, %s303_s23 }
  0x1b   :  { %p368_p10 = scmp.lt.s32.totalorder %s366_s24, %s362_s4 }
  0x1d   :  { %p369_p11 = por %p368_p10, %p367_p9 }
  0x1e   :  { %61 = vadd.xlane.f32.xlu0 %v60_v7 }
  0x1f   :  { %p370_p12 = pnand %p369_p11, %p363_p8 }
  0xa7   :  { %v59_v12 = vpop.xlane.xlu0 %58 }
  0xa8   :  { %v64_v14 = vadd.f32 %v63_v11, %v59_v12 }
  0xaa   :  { %v73_v17 = vrot.slane %v64_v14, %v72_v13 }
  0xab   :  { %v62_v15 = vpop.xlane.xlu0 %61 }
  0xac   :  { %v65_v16 = vadd.f32 %v63_v11, %v62_v15  ;;  %v392_v11 = vmov 0.0  }
  0xad   :  { %318 = vmatprep.subr.mxu0 %v392_v11  ;;  %320 = vmatprep.mubr.msk.f32.mxu0 %vm393_vm4, %v392_v11 }
  0xae   :  { %v77_v18 = vrot.slane %v65_v16, %v72_v13 }
  0xb0   :  { %v79_v19 = vsel %vm78_vm1, %v77_v18, %v73_v17 }
  0xb1   :  { %v82_v20 = vsel %vm81_vm2, %v79_v19, -inf }
  0xb2   :  { %83 = vmax.xlane.f32.xlu1 %v82_v20 }
 0x13f   :  { %v84_v24 = vpop.xlane.xlu1 %83 }
 0x140   :  { %v89_v25 = vrot.slane %v84_v24, %v88_v22  ;;  %v93_v26 = vrot.slane %v84_v24, %v92_v23 }
 0x142   :  { %v96_v27 = vsub.f32 %v64_v14, %v89_v25  ;;  %v97_v28 = vsub.f32 %v65_v16, %v93_v26  ;;  %v312_v16 = vld [vmem:[%s502_s3] ss:$0 sm:$0xff] }
 0x144   :  { %v98_v29 = vmul.f32 1.442695, %v96_v27  ;;  %v100_v30 = vmul.f32 1.442695, %v97_v28 }
 0x146   :  { %332 = vpow2.f32 %v98_v29 }
 0x147   :  { %334 = vpow2.f32 %v100_v30  ;;  %v204_v30 = vld [vmem:[%s504_s5] sm:$0x1] }
 0x150   :  { %v333_v31 = vpop.eup %332 }
 0x151   :  { %v335_v32 = vpop.eup %334  ;;  %105 = vperm.xlu1 %330, %v333_v31  }
 0x152   :  { %108 = vperm.xlu0 %331, %v335_v32  }
 0x1d0   :  { %v106_v33 = vpop.permute.xlu1 %105 }
 0x1d1   :  { %v109_v34 = vpop.permute.xlu0 %108  ;;  %v113_v35 = vrot.slane %v106_v33, %v72_v13  ;;  %v125_v40 = vmul.f32 %v106_v33, %v44_v1 }
 0x1d2   :  { %v117_v36 = vrot.slane %v109_v34, %v72_v13  ;;  %v126_v39 = vmul.f32 %v109_v34, %v45_v3 }
 0x1d3   :  { %v127_v42 = vsel %vm56_vm0, %v125_v40, 0.0 }
 0x1d4   :  { %v118_v37 = vsel %vm78_vm1, %v117_v36, %v113_v35  ;;  %v134_v41 = vsel %vm56_vm0, %v126_v39, 0.0  ;;  %v128_v44 = vrot.slane %v127_v42, 4 }
 0x1d5   :  { %v120_v38 = vsel %vm81_vm2, %v118_v37, 0.0  ;;  %v135_v43 = vrot.slane %v134_v41, 4 }
 0x1d6   :  { %121 = vadd.xlane.f32.xlu1 %v120_v38  ;;  %v129_v46 = vadd.f32 %v128_v44, %v127_v42 }
 0x1d7   :  { %v136_v45 = vadd.f32 %v135_v43, %v134_v41 }
 0x1d8   :  { %v130_v49 = vrot.slane %v129_v46, 2 }
 0x1d9   :  { %v137_v47 = vrot.slane %v136_v45, 2 }
 0x1da   :  { %v131_v51 = vadd.f32 %v130_v49, %v129_v46 }
 0x1db   :  { %v138_v50 = vadd.f32 %v137_v47, %v136_v45 }
 0x1dc   :  { %v132_v53 = vrot.slane %v131_v51, 1 }
 0x1dd   :  { %v139_v52 = vrot.slane %v138_v50, 1 }
 0x1de   :  { %v133_v57 = vadd.f32 %v132_v53, %v131_v51 }
 0x1df   :  { %v140_v55 = vadd.f32 %v139_v52, %v138_v50 }
 0x263   :  { %v122_v48 = vpop.xlane.xlu1 %121 }
 0x264   :  { %336 = vrcp.f32 %v122_v48 }
 0x26e   :  { %v337_v54 = vpop.eup %336 }
 0x26f   :  { %v143_v56 = vrot.slane %v337_v54, 1  ;;  %v146_v59 = vmul.f32 %v337_v54, %v133_v57 }
 0x271   :  { %v147_v58 = vmul.f32 %v143_v56, %v140_v55 }
 0x273   :  { %v150_v60 = vrot.slane %v147_v58, 7 }
 0x275   :  { %v151_v61 = vsel %vm78_vm1, %v150_v60, %v146_v59 }
 0x276   :  { %v154_v62 = vsel %vm153_vm3, %v151_v61, 0.0 }
 0x277   :  { %155 = vadd.xlane.f32.xlu0 %v154_v62 }
 0x304   :  { %v156_v63 = vpop.xlane.xlu0 %155 }
 0x305   :  { %v158_v0 = vmul.f32 0.03125, %v156_v63 }
 0x307   :  { %v160_v1 = vrot.slane %v158_v0, 1  ;;  %v163_v2 = vsub.f32 %v146_v59, %v158_v0 }
 0x309   :  { %v164_v3 = vsub.f32 %v147_v58, %v160_v1  ;;  %v165_v5 = vmul.f32 %v163_v2, %v163_v2 }
 0x30b   :  { %v166_v4 = vmul.f32 %v164_v3, %v164_v3 }
 0x30d   :  { %v169_v6 = vrot.slane %v166_v4, 7 }
 0x30f   :  { %v170_v7 = vsel %vm78_vm1, %v169_v6, %v165_v5 }
 0x310   :  { %v172_v8 = vsel %vm153_vm3, %v170_v7, 0.0 }
 0x311   :  { %173 = vadd.xlane.f32.xlu1 %v172_v8 }
 0x322   :  { %208 = vperm.xlu1 %330, %v205_v9  }
 0x39e   :  { %v174_v12 = vpop.xlane.xlu1 %173 }
 0x39f   :  { %v175_v13 = vmul.f32 0.03125, %v174_v12 }
 0x3a1   :  { %v176_v14 = vadd.f32 1e-05, %v175_v13 }
 0x3a2   :  { %v209_v31 = vpop.permute.xlu1 %208 }
 0x3a3   :  { %338 = vrsqrt.f32 %v176_v14  ;;  %v214_v32 = vrot.slane %v209_v31, %v88_v22 }
 0x3ad   :  { %v339_v15 = vpop.eup %338 }
 0x3ae   :  { %v179_v17 = vrot.slane %v339_v15, 1  ;;  %v182_v18 = vmul.f32 %v339_v15, %v163_v2 }
 0x3b0   :  { %v183_v19 = vmul.f32 %v179_v17, %v164_v3  ;;  %v191_v20 = vmul.f32 %v312_v16, %v182_v18 }
 0x3b2   :  { %v192_v23 = vmul.f32 %v312_v16, %v183_v19  ;;  %v200_v24 = vadd.f32 %v313_v21, %v191_v20 }
 0x3b4   :  { %v201_v25 = vadd.f32 %v313_v21, %v192_v23  ;;  %v202_v27 = vmax.f32 %v200_v24, 0.0 }
 0x3b6   :  { %v203_v26 = vmax.f32 %v201_v25, 0.0 }
 0x3b8   :  { %v217_v28 = vrot.slane %v203_v26, 7 }
 0x3ba   :  { %v218_v29 = vsel %vm78_vm1, %v217_v28, %v202_v27 }
 0x3bb   :  { %319 = vmatpush3.xpose.msk.msra.mxu0 %vm56_vm0, %v218_v29 }
 0x3be   :  { %321 = vmatmul.mubr.msk.f32.vlgmr.msra.gmra.mrb[0].mxu0 %vm56_vm0, %v204_v30 }
 0x491   :  { %v290_v33 = vpop.f32.mrb[0].mxu0 }
 0x492   :  { %v291_v34 = vadd.f32 %v290_v33, %v214_v32  ;;  %v322_v35 = vpop.f32.mrb[1].mxu0 }
 0x494   :  { %295 = vst.msk [vmem:[#allocation7] sm:$0x1] %vm294_vm5, %v291_v34 }
 0x495   :  { %373 = shalt.err (!%p370_p12)
}
 0x496   :  { %s374_s26 = scalar_lea.hbm %s506_s7, 16 }
 0x497   :  { %p375_p13 = scmp.ne.s32.totalorder %s506_s7, %s374_s26  ;;  %p378_p0 = scmp.lt.u32.totalorder %s374_s26, %s506_s7 }
 0x499   :  { %p380_p1 = pnand %p378_p0, %p375_p13 }
 0x49b   :  { %383 = shalt.err (!%p380_p1)
}
 0x49c   :  { %305 = dma.vmem_to_hbm [thread:$0]  %s303_s23, 16, %s506_s7, [#allocation6]  }
 0x49d   :  { %386 = dma.done.wait [#allocation6], 16  }
 0x49e   :  { %387 = vsyncadd [#allocation6], 4294967280 }
 0x49f   :  { %309 = vsyncpa [#allocation5], 1 }
 0x4a0   :  { %310 = vsyncpa [#allocation6], 1 }

</bundles_post_ra>
